<compile_context>
chip_gen: v7x
topology: tpu7x:2x2x1
jax: 0.10.0
libtpu: 0.0.40
codegen_flags: <defaults>
</compile_context>

<pallas_src>
import math
import jax
import jax.numpy as jnp
from jax.experimental import pallas as pl
from jax.experimental.pallas import tpu as pltpu


# ----------------------------- parameter construction -----------------------------

def sinusoid_table(n, d_model):
    """Matches PyTorch PositionalEmbedding / FixedEmbedding buffer construction."""
    pos = jnp.arange(n, dtype=jnp.float32)[:, None]
    div = jnp.exp(jnp.arange(0, d_model, 2, dtype=jnp.float32)
                  * -(math.log(10000.0) / d_model))
    ang = pos * div[None, :]
    tab = jnp.zeros((n, d_model), jnp.float32)
    tab = tab.at[:, 0::2].set(jnp.sin(ang))
    tab = tab.at[:, 1::2].set(jnp.cos(ang))
    return tab


def kaiming_normal_conv1d(key, d_model, c_in, ksize=3, negative_slope=0.01):
    """nn.init.kaiming_normal_(mode='fan_in', nonlinearity='leaky_relu')."""
    gain = math.sqrt(2.0 / (1.0 + negative_slope ** 2))
    fan_in = c_in * ksize
    std = gain / math.sqrt(fan_in)
    return std * jax.random.normal(key, (d_model, c_in, ksize), dtype=jnp.float32)


# ---------------------------------- Pallas kernel ----------------------------------

VPAD = 128  # temporal-table rows padded to one full lane tile (76 -> 128)


def data_embedding_kernel(x3_ref, mark_ref, wtab_ref, wconv_ref, pe_ref, o_ref):
    # x3_ref   : (1, TL, K3)   im2col values [x_{l-1} | x_l | x_{l+1} | 0-pad]  (bf16)
    # mark_ref : (1, TL, 4)    int32 indices into the concatenated temporal table
    # wtab_ref : (VPAD, DP)    padded temporal table                            (bf16)
    # wconv_ref: (K3, DP)      conv taps in im2col column order                 (bf16)
    # pe_ref   : (TL, DP)      positional-embedding tile                        (bf16)
    # o_ref    : (1, TL, DP)   f32
    tl = o_ref.shape[1]

    # Multi-hot temporal activation at full 128-lane width.  The four sub-table
    # index ranges are disjoint by construction, so OR the boolean compares and
    # cast once (3 int ORs + 1 cast instead of 4 casts + 4 f32 adds).
    ids = mark_ref[0]                                          # (TL, 4) int32
    lane = jax.lax.broadcasted_iota(jnp.int32, (tl, VPAD), 1)  # (TL, 128)
    hit = ((ids[:, 0:1] == lane) | (ids[:, 1:2] == lane)
           | (ids[:, 2:3] == lane) | (ids[:, 3:4] == lane))
    hot = hit.astype(wtab_ref.dtype)                           # (TL, VPAD)

    # Two K-aligned MXU dots accumulating in f32; accumulator initialised from pe.
    out = (pe_ref[...].astype(jnp.float32)
           + jnp.dot(hot, wtab_ref[...], preferred_element_type=jnp.float32)
           + jnp.dot(x3_ref[0], wconv_ref[...], preferred_element_type=jnp.float32))
    o_ref[0] = out.astype(o_ref.dtype)


# ------------------------------------- wrapper -------------------------------------

def _pick_seq_tile(L, seq_tile):
    """Largest multiple of 8 that divides L and does not exceed seq_tile."""
    tl = min(seq_tile, L)
    tl -= tl % 8
    while tl > 8 and L % tl != 0:
        tl -= 8
    assert tl >= 8 and tl % 8 == 0 and L % tl == 0, \
        "L must be divisible by an 8-multiple sequence tile"
    return tl


def data_embedding(x, x_mark, conv_w, temp_table, pe, *, seq_tile=512,
                   compute_dtype=jnp.bfloat16):
    """x: (B, L, c_in) f32, x_mark: (B, L, 4) int [month, day, weekday, hour]."""
    B, L, C = x.shape
    D = conv_w.shape[0]
    V = temp_table.shape[0]
    assert V <= VPAD

    tl = _pick_seq_tile(L, seq_tile)

    # Lane-dense output: pad d_model up to a multiple of 128.
    DP = ((D + 127) // 128) * 128

    # im2col with circular wrap: conv1d(k=3, padding=1, circular) becomes one matmul.
    # TODO(synk): for large c_in, replace this HBM-materialized im2col with a haloed
    # (tl+2)-row block / circular-edge DMAs to avoid the extra untimed HBM pass.
    x3 = jnp.concatenate(
        [jnp.roll(x, 1, axis=1), x, jnp.roll(x, -1, axis=1)], axis=-1)   # (B, L, 3C)
    K3 = ((3 * C + 7) // 8) * 8
    x3 = jnp.pad(x3, ((0, 0), (0, 0), (0, K3 - 3 * C))).astype(compute_dtype)

    # Conv taps in im2col column order: row k*C + c == torch_weight[d, c, k].
    w_conv = jnp.transpose(conv_w, (2, 1, 0)).reshape(3 * C, D)
    w_conv = jnp.pad(w_conv, ((0, K3 - 3 * C), (0, 0)))
    w_tab = jnp.pad(temp_table.astype(jnp.float32), ((0, VPAD - V), (0, 0)))
    pe_f = pe.astype(jnp.float32)
    if DP != D:
        w_conv = jnp.pad(w_conv, ((0, 0), (0, DP - D)))
        w_tab = jnp.pad(w_tab, ((0, 0), (0, DP - D)))
        pe_f = jnp.pad(pe_f, ((0, 0), (0, DP - D)))
    w_conv = w_conv.astype(compute_dtype)
    w_tab = w_tab.astype(compute_dtype)
    pe_f = pe_f.astype(compute_dtype)

    # Offsets into the concatenated temporal table: [month, day, weekday, hour].
    # NOTE: marks must stay in range (13/32/7/24); out-of-range values would alias
    # into the neighbouring sub-table (PyTorch's nn.Embedding would raise instead).
    # NOTE: the (1, tl, 4) mark block is lane-sparse, but it is a tiny stream.
    offsets = jnp.array([0, 13, 13 + 32, 13 + 32 + 7], dtype=jnp.int32)
    mark_ids = x_mark.astype(jnp.int32) + offsets[None, None, :]

    esz = jnp.dtype(compute_dtype).itemsize
    K = VPAD + K3
    cost = pl.CostEstimate(
        flops=2 * B * L * K * DP,
        transcendentals=0,
        bytes_accessed=(esz * (B * L * K3 + K * DP + L * DP)
                        + 4 * (B * L * 4 + B * L * DP)),
    )

    # Grid: (L//tl, B) with batch innermost so the pe tile index is invariant
    # across the inner axis (fetched once per sequence tile, not once per batch).
    out = pl.pallas_call(
        data_embedding_kernel,
        out_shape=jax.ShapeDtypeStruct((B, L, DP), jnp.float32),
        grid=(L // tl, B),
        in_specs=[
            pl.BlockSpec((1, tl, K3), lambda j, b: (b, j, 0)),
            pl.BlockSpec((1, tl, 4), lambda j, b: (b, j, 0)),
            pl.BlockSpec((VPAD, DP), lambda j, b: (0, 0)),
            pl.BlockSpec((K3, DP), lambda j, b: (0, 0)),
            pl.BlockSpec((tl, DP), lambda j, b: (j, 0)),
        ],
        out_specs=pl.BlockSpec((1, tl, DP), lambda j, b: (b, j, 0)),
        compiler_params=pltpu.CompilerParams(
            dimension_semantics=("parallel", "parallel"),
            vmem_limit_bytes=32 * 1024 * 1024,
        ),
        cost_estimate=cost,
    )(x3, mark_ids, w_tab, w_conv, pe_f)

    # TODO(synk): when D is not a multiple of 128 in real configs, keep the padded
    # width downstream instead of this extra HBM read+write slice.
    return out[:, :, :D] if DP != D else out


# ------------------------------------ reference ------------------------------------

def data_embedding_ref(x, x_mark, conv_w, tables, pe):
    B, L, C = x.shape
    xp = jnp.concatenate([x[:, -1:, :], x, x[:, :1, :]], axis=1)
    val = 0.0
    for k in range(3):
        val = val + jnp.einsum('blc,dc->bld', xp[:, k:k + L, :], conv_w[:, :, k])
    month_t, day_t, wd_t, hour_t = tables
    temporal = (month_t[x_mark[:, :, 0]] + day_t[x_mark[:, :, 1]]
                + wd_t[x_mark[:, :, 2]] + hour_t[x_mark[:, :, 3]])
    return val + temporal + pe[None]


# --------------------------------------- main ---------------------------------------

if __name__ == "__main__":
    # d_model multiple of 128 -> lane-dense output stores; demo L collapses to one
    # sequence tile (grid = (1, B) = 2 parallel steps, so both v7x TCs get work).
    B, L, c_in, d_model = 2, 16, 4, 128

    key = jax.random.PRNGKey(0)
    k_x, k_w, k_m, k_d, k_wd, k_h = jax.random.split(key, 6)

    x = jax.random.normal(k_x, (B, L, c_in), dtype=jnp.float32)
    # x_mark columns: [month(0..12), day(0..31), weekday(0..6), hour(0..23)]
    x_mark = jnp.stack(
        [
            jax.random.randint(k_m, (B, L), 0, 13),
            jax.random.randint(k_d, (B, L), 0, 32),
            jax.random.randint(k_wd, (B, L), 0, 7),
            jax.random.randint(k_h, (B, L), 0, 24),
        ],
        axis=-1,
    ).astype(jnp.int32)

    # Parameters (deterministic, synthetic).
    conv_w = kaiming_normal_conv1d(k_w, d_model, c_in)            # (D, C, 3)
    month_tab = sinusoid_table(13, d_model)
    day_tab = sinusoid_table(32, d_model)
    weekday_tab = sinusoid_table(7, d_model)
    hour_tab = sinusoid_table(24, d_model)
    temp_table = jnp.concatenate(
        [month_tab, day_tab, weekday_tab, hour_tab], axis=0)      # (76, D)
    pe = sinusoid_table(5000, d_model)[:L]                        # (L, D)

    compute_dtype = jnp.bfloat16  # bf16 operands, f32 accumulation / output
    out = data_embedding(x, x_mark, conv_w, temp_table, pe,
                         seq_tile=512, compute_dtype=compute_dtype)
    out = jax.block_until_ready(out)

    ref = data_embedding_ref(x, x_mark, conv_w,
                             (month_tab, day_tab, weekday_tab, hour_tab), pe)
    assert out.shape == (B, L, d_model)
    # Tolerance is set by the operand precision (bf16 rounding of x3 / weights / pe).
    atol = 1e-1 if compute_dtype == jnp.bfloat16 else 1e-4
    assert jnp.allclose(out, ref, atol=atol), "mismatch vs JAX reference"

    print("KERNEL_OK")
</pallas_src>

<mosaic_0001>
module attributes {stable_mosaic.version = 11 : i64} {
  func.func @data_embedding_kernel(%arg0: i32, %arg1: i32, %arg2: memref<1x16x16xbf16, #tpu.memory_space<vmem>>, %arg3: memref<1x16x4xi32, #tpu.memory_space<vmem>>, %arg4: memref<128x128xbf16, #tpu.memory_space<vmem>>, %arg5: memref<16x128xbf16, #tpu.memory_space<vmem>>, %arg6: memref<16x128xbf16, #tpu.memory_space<vmem>>, %arg7: memref<1x16x128xf32, #tpu.memory_space<vmem>>) attributes {dimension_semantics = [#tpu.dimension_semantics<parallel>, #tpu.dimension_semantics<parallel>], iteration_bounds = array<i64: 1, 2>, scalar_prefetch = 0 : i64, scratch_operands = 0 : i64, tpu.core_type = #tpu.core_type<tc>, window_params = [{transform_indices = @transform_0, window_bounds = array<i64: 1, 16, 16>}, {transform_indices = @transform_1, window_bounds = array<i64: 1, 16, 4>}, {pipeline_mode = #tpu.pipeline_mode<synchronous>, transform_indices = @transform_2, window_bounds = array<i64: 128, 128>}, {pipeline_mode = #tpu.pipeline_mode<synchronous>, transform_indices = @transform_3, window_bounds = array<i64: 16, 128>}, {transform_indices = @transform_4, window_bounds = array<i64: 16, 128>}, {transform_indices = @transform_5, window_bounds = array<i64: 1, 16, 128>}]} {
    %c0 = arith.constant 0 : index
    %c0_0 = arith.constant 0 : index
    %c0_1 = arith.constant 0 : index
    %0 = vector.load %arg3[%c0, %c0_0, %c0_1] : memref<1x16x4xi32, #tpu.memory_space<vmem>>, vector<1x16x4xi32>
    %1 = vector.shape_cast %0 : vector<1x16x4xi32> to vector<16x4xi32>
    %2 = tpu.iota {dimensions = array<i32: 1>} : vector<16x128xi32>
    %3 = vector.extract_strided_slice %1 {offsets = [0, 0], sizes = [16, 1], strides = [1, 1]} : vector<16x4xi32> to vector<16x1xi32>
    %4 = vector.broadcast %3 : vector<16x1xi32> to vector<16x128xi32>
    %5 = arith.cmpi eq, %4, %2 : vector<16x128xi32>
    %6 = vector.extract_strided_slice %1 {offsets = [0, 1], sizes = [16, 1], strides = [1, 1]} : vector<16x4xi32> to vector<16x1xi32>
    %7 = vector.broadcast %6 : vector<16x1xi32> to vector<16x128xi32>
    %8 = arith.cmpi eq, %7, %2 : vector<16x128xi32>
    %9 = arith.ori %5, %8 : vector<16x128xi1>
    %10 = vector.extract_strided_slice %1 {offsets = [0, 2], sizes = [16, 1], strides = [1, 1]} : vector<16x4xi32> to vector<16x1xi32>
    %11 = vector.broadcast %10 : vector<16x1xi32> to vector<16x128xi32>
    %12 = arith.cmpi eq, %11, %2 : vector<16x128xi32>
    %13 = arith.ori %9, %12 : vector<16x128xi1>
    %14 = vector.extract_strided_slice %1 {offsets = [0, 3], sizes = [16, 1], strides = [1, 1]} : vector<16x4xi32> to vector<16x1xi32>
    %15 = vector.broadcast %14 : vector<16x1xi32> to vector<16x128xi32>
    %16 = arith.cmpi eq, %15, %2 : vector<16x128xi32>
    %17 = arith.ori %13, %16 : vector<16x128xi1>
    %18 = arith.extui %17 : vector<16x128xi1> to vector<16x128xi32>
    %19 = arith.sitofp %18 : vector<16x128xi32> to vector<16x128xf32>
    %20 = arith.truncf %19 : vector<16x128xf32> to vector<16x128xbf16>
    %c0_2 = arith.constant 0 : index
    %c0_3 = arith.constant 0 : index
    %21 = vector.load %arg6[%c0_2, %c0_3] : memref<16x128xbf16, #tpu.memory_space<vmem>>, vector<16x128xbf16>
    %22 = arith.extf %21 : vector<16x128xbf16> to vector<16x128xf32>
    %c0_4 = arith.constant 0 : index
    %c0_5 = arith.constant 0 : index
    %23 = vector.load %arg4[%c0_4, %c0_5] : memref<128x128xbf16, #tpu.memory_space<vmem>>, vector<128x128xbf16>
    %cst = arith.constant dense<0.000000e+00> : vector<16x128xf32>
    %24 = tpu.matmul %20, %23, %cst {dimension_numbers = #tpu.dot_dimension_numbers<[1], [0], [0], [1], [0, 0, 1, 1], [], []>} : vector<16x128xbf16>, vector<128x128xbf16>, vector<16x128xf32> -> vector<16x128xf32>
    %25 = arith.addf %22, %24 : vector<16x128xf32>
    %c0_6 = arith.constant 0 : index
    %c0_7 = arith.constant 0 : index
    %c0_8 = arith.constant 0 : index
    %26 = vector.load %arg2[%c0_6, %c0_7, %c0_8] : memref<1x16x16xbf16, #tpu.memory_space<vmem>>, vector<1x16x16xbf16>
    %27 = vector.shape_cast %26 : vector<1x16x16xbf16> to vector<16x16xbf16>
    %c0_9 = arith.constant 0 : index
    %c0_10 = arith.constant 0 : index
    %28 = vector.load %arg5[%c0_9, %c0_10] : memref<16x128xbf16, #tpu.memory_space<vmem>>, vector<16x128xbf16>
    %cst_11 = arith.constant dense<0.000000e+00> : vector<16x128xf32>
    %29 = tpu.matmul %27, %28, %cst_11 {dimension_numbers = #tpu.dot_dimension_numbers<[1], [0], [0], [1], [0, 0, 1, 1], [], []>} : vector<16x16xbf16>, vector<16x128xbf16>, vector<16x128xf32> -> vector<16x128xf32>
    %30 = arith.addf %25, %29 : vector<16x128xf32>
    %c0_12 = arith.constant 0 : index
    %c0_13 = arith.constant 0 : index
    %c0_14 = arith.constant 0 : index
    %31 = vector.load %arg7[%c0_12, %c0_13, %c0_14] : memref<1x16x128xf32, #tpu.memory_space<vmem>>, vector<1x16x128xf32>
    %32 = vector.shape_cast %31 : vector<1x16x128xf32> to vector<16x128xf32>
    %33 = vector.shape_cast %30 : vector<16x128xf32> to vector<1x16x128xf32>
    tpu.vector_store %arg7[%c0_12, %c0_13, %c0_14], %33 {strides = array<i32>} : memref<1x16x128xf32, #tpu.memory_space<vmem>>, vector<1x16x128xf32>,
    return
  }
  func.func @transform_0(%arg0: i32, %arg1: i32) -> (i32, i32, i32) {
    %c0_i32 = arith.constant 0 : i32
    %c0_i32_0 = arith.constant 0 : i32
    return %arg1, %arg0, %c0_i32 : i32, i32, i32
  }
  func.func @transform_1(%arg0: i32, %arg1: i32) -> (i32, i32, i32) {
    %c0_i32 = arith.constant 0 : i32
    %c0_i32_0 = arith.constant 0 : i32
    return %arg1, %arg0, %c0_i32 : i32, i32, i32
  }
  func.func @transform_2(%arg0: i32, %arg1: i32) -> (i32, i32) {
    %c0_i32 = arith.constant 0 : i32
    %c0_i32_0 = arith.constant 0 : i32
    %c0_i32_1 = arith.constant 0 : i32
    return %c0_i32, %c0_i32_0 : i32, i32
  }
  func.func @transform_3(%arg0: i32, %arg1: i32) -> (i32, i32) {
    %c0_i32 = arith.constant 0 : i32
    %c0_i32_0 = arith.constant 0 : i32
    %c0_i32_1 = arith.constant 0 : i32
    return %c0_i32, %c0_i32_0 : i32, i32
  }
  func.func @transform_4(%arg0: i32, %arg1: i32) -> (i32, i32) {
    %c0_i32 = arith.constant 0 : i32
    %c0_i32_0 = arith.constant 0 : i32
    return %arg0, %c0_i32 : i32, i32
  }
  func.func @transform_5(%arg0: i32, %arg1: i32) -> (i32, i32, i32) {
    %c0_i32 = arith.constant 0 : i32
    %c0_i32_0 = arith.constant 0 : i32
    return %arg1, %arg0, %c0_i32 : i32, i32, i32
  }
}

</mosaic_0001>

<bundles_post_ra>
// kernel: tpu_custom_call.1
= control target key start
LH: loop header
LB: loop body
LE: loop exit
PB: predicated region body
PF: predicated region fallthrough
CT: control target
= control target key end

     0   :  { %10 = vsyncpa [#allocation3], 0  ;;  %s1181_s0 = inlined_call_operand.vmem [shape: bf16[2,16,16], index: 0, kind: input, shape index: {}]   ;;  %s1182_s1 = inlined_call_operand.vmem [shape: s32[2,16,4], index: 1, kind: input, shape index: {}]   ;;  %s1183_s2 = inlined_call_operand.hbm [shape: bf16[128,128], index: 2, kind: input, shape index: {}]   ;;  %s1184_s3 = inlined_call_operand.vmem [shape: bf16[16,128], index: 3, kind: input, shape index: {}]   ;;  %s1185_s4 = inlined_call_operand.vmem [shape: bf16[16,128], index: 4, kind: input, shape index: {}]   ;;  %s1186_s5 = inlined_call_operand.hbm [shape: f32[2,16,128], index: 5, kind: output, shape index: {}]  }
   0x1   :  { %11 = vsyncpa [#allocation4], 0 }
   0x2   :  { %13 = vsyncpa [#allocation4 + $0x1], 0  ;;  %s1019_s18 = smov 0   ;;  %s1021_s19 = smov 0  }
   0x3   :  { %s1023_s20 = smov 0   ;;  %s1025_s21 = smov 0  }
   0x4   :  { %s1027_s22 = smov 0   ;;  %s1029_s23 = smov 0  }
   0x5 LB: > { %s690_s24 = sadd.s32 4294967295, %s974_s23   ;;  %s691_s25 = sadd.s32 4294967294, %s974_s23   ;;  %s974_s23 = sphi %s1029_s23, %s19_s23   ;;  %s970_s22 = sphi %s1027_s22, %s1204_s22   ;;  %s966_s21 = sphi %s1025_s21, %s1203_s21   ;;  %s962_s20 = sphi %s1023_s20, %s1202_s20   ;;  %s958_s19 = sphi %s1021_s19, %s1201_s19   ;;  %s954_s18 = sphi %s1019_s18, %s1200_s18  }
   0x6   : > { %s28_s26 = sadd.s32 1, %s970_s22  ;;  %s164_s27 = sadd.s32 1, %s962_s20 }
   0x7   : > { %p29_p0 = scmp.ge.s32.totalorder %s28_s26, 2  ;;  %p174_p1 = scmp.ne.s32.totalorder %s962_s20, %s958_s19 }
   0x8   : > { %p175_p2 = scmp.eq.s32.totalorder %s690_s24, 1  ;;  %p180_p3 = scmp.ne.s32.totalorder %s958_s19, %s954_s18 }
   0x9   : > { %s1206_s26 = smov (%p29_p0, %s28_s26), 0  ;;  %p181_p5 = scmp.eq.s32.totalorder %s691_s25, 1 }
   0xa   : > { %p1059_p4 = por %p175_p2, %p174_p1  ;;  %s159_s29 = ssub.s32 %s970_s22, %s1206_s26 }
   0xb   : > { %p692_p6 = scmp.ge.s32.totalorder %s974_s23, 1  ;;  %p162_p7 = scmp.eq.s32.totalorder %s159_s29, 0 }
   0xc   : > { %s1191_s28 = scalar_select %p1059_p4, 1, 0 }
   0xd   : > { %p1066_p8 = por %p181_p5, %p180_p3  ;;  %p188_p9 = scmp.lt.s32.totalorder %s974_s23, 3 }
   0xe   : > { %s1072_s6 = scalar_select %p162_p7, %s962_s20, %s164_s27  }
   0xf   : > { %s1192_s30 = scalar_select %p1066_p8, 1, 0 }
  0x10   : > { %p1074_p10 = pnand %p692_p6, %p188_p9  ;;  %p1078_p11 = scmp.eq.s32.totalorder %s690_s24, 0 }
  0x11   : > { %s976_s9 = smov [#allocation2]   ;;  %s864_s14 = scalar_lea.hbm %s1183_s2, 1024 }
  0x12   : > { %s1193_s7 = scalar_select %p1074_p10, 1, 0 }
  0x13   : > { %s1194_s8 = scalar_select %p1078_p11, 1, 0 }
  0x14   : > { %p777_p12 = pneg %p1074_p10  ;;  %s200_s10 = sshll.u32 %s976_s9, 4  ;;  %s201_s10 = int_to_ptr.vmem [resolvable:$true] %s200_s10 }
  0x15   : > { %p865_p0 = scmp.ne.s32.totalorder %s1183_s2, %s864_s14  ;;  %p871_p5 = scmp.lt.u32.totalorder %s864_s14, %s1183_s2 }
  0x16   : > { %p1086_p13 = pnand %p1078_p11, %p777_p12 }
  0x18   : > { %p866_p1 = pneg %p1086_p13 }
  0x1a   : > { %p867_p2 = pnand %p866_p1, %p865_p0 }
  0x1c   : > { %p868_p3 = pneg %p867_p2 }
  0x1e   : > { %p873_p6 = pnand %p871_p5, %p868_p3 }
  0x20   : > { %876 = shalt.err (!%p873_p6)
}
  0x21   : > { %s877_s25 = scalar_lea.vmem %s201_s10, 1024  ;;  %p885_p8 = scmp.lt.s32.totalorder %s201_s10, %s201_s10 }
  0x22   : > { %p878_p7 = scmp.ne.s32.totalorder %s201_s10, %s877_s25  ;;  %p886_p4 = scmp.lt.s32.totalorder %s877_s25, %s877_s25 }
  0x24   : > { %p880_p9 = pnand %p878_p7, %p866_p1  ;;  %p887_p11 = por %p886_p4, %p885_p8 }
  0x26   : > { %p881_p12 = pneg %p880_p9 }
  0x28   : > { %p888_p10 = pnand %p887_p11, %p881_p12 }
  0x2a   : > { %891 = shalt.err (!%p888_p10)
}
  0x2b   : > { %s977_s27 = smov 64   ;;  %s978_s29 = smov 4  }
  0x2c   : > { %780 = dma.hbm_to_vmem [thread:$0]  (!%p1086_p13), %s1183_s2, 1024, %s201_s10, [#allocation3], %s977_s27, %s977_s27, %s978_s29  }
  0x2d   : > { %p1196_p0 = scmp.ne.s32.totalorder %s1193_s7, 0 }
  0x2e   : > { %p1197_p2 = scmp.ne.s32.totalorder (!%p1196_p0), %s1194_s8, 0 }
  0x2f   : > { %254 = sbr.rel (%p1196_p0) target bundleno = 441 (0x1b9), region = 40 }
  0x36   : > { %945 = dma.done.wait (%p1197_p2), [#allocation3], 1024  }
  0x37   : > { %947 = vsyncadd (%p1197_p2), [#allocation3], 4294966272  ;;  %p301_p4 = scmp.lt.s32.totalorder %s966_s21, 1  ;;  %v979_v0 = vmov 1   ;;  %v980_v1 = vmov 0   ;;  %v981_v2 = vmov 0.0   ;;  %v330_v19 = vlaneseq }
  0x38   : > { %849 = vset.pattern.permute.xlu1 %v979_v0  ;;  %848 = vset.pattern.permute.xlu0 %v980_v1  ;;  %v854_v4 = vld [vmem:[#allocation2] sm:$0xff]   ;;  %v855_v6 = vld [vmem:[#allocation2 + $0x8] sm:$0xff]   ;;  %v856_v7 = vld [vmem:[#allocation2 + $0x10] sm:$0xff]   ;;  %v982_v8 = vmov 2   ;;  %v983_v11 = vmov 3   ;;  %vm984_vm0 = vmmov 0  }
  0x39   : > { %s302_s11 = scalar_select %p301_p4, %s966_s21, 1  ;;  %741 = vmatprep.subr.bf16.mxu1 %v981_v2  ;;  %761 = vmatprep.subr.bf16.mxu0 %v981_v2  ;;  %v857_v9 = vld [vmem:[#allocation2 + $0x18] sm:$0xff]   ;;  %v861_v10 = vld [vmem:[%s1184_s3] sm:$0xff]   ;;  %vm501_vm1 = vcmask 130048   ;;  %v859_v14 = vld [vmem:[#allocation2 + $0x28] sm:$0xff]   ;;  %v331_v22 = vand.u32 127, %v330_v19 }
  0x3a   : > { %742 = vmatpush3.bf16.msra.mxu1 %v854_v4  ;;  %v858_v12 = vld [vmem:[#allocation2 + $0x20] sm:$0xff]   ;;  %762 = vmatpush3.bf16.msra.mxu0 %v861_v10  ;;  %v860_v15 = vld [vmem:[#allocation2 + $0x30] sm:$0xff]   ;;  %v862_v16 = vld [vmem:[#allocation2 + $0x38] sm:$0xff]   ;;  %v985_v27 = vmov 1.0|1.0   ;;  %s297_s27 = sand.u32 1, %s958_s19  }
  0x3b   : > { %s724_s10 = sshll.u32 %s302_s11, 4  ;;  %s723_s8 = sshll.u32 %s302_s11, 3  ;;  %743 = vmatprep.subr.bf16.mxu1 %v981_v2  ;;  %763 = vmatprep.mubr.msk.bf16.mxu0 %vm984_vm0, %v981_v2  ;;  %v727_v32 = vld [vmem:[%s1185_s4] sm:$0xff]  }
  0x3c   : > { %s318_s14 = scalar_lea.vmem %s1182_s1, %s724_s10  ;;  %s308_s17 = scalar_lea.vmem %s1181_s0, %s723_s8  ;;  %757 = vmatprep.mubr.msk.bf16.mxu1 %vm984_vm0, %v981_v2  ;;  %v728_v33 = vunpack.c.l.bf16 %v727_v32  ;;  %v729_v34 = vunpack.c.h.bf16 %v727_v32 }
  0x3d   : > { %v328_v3 = vld [vmem:[%s318_s14] sm:$0xff]  ;;  %v329_v5 = vld [vmem:[%s318_s14 + $0x8] sm:$0xff]  ;;  %s698_s12 = sshll.u32 %s297_s27, 4  ;;  %s725_s7 = sshll.u32 %s966_s21, 8 }
  0x3e   : > { %341 = vperm.xlu1 %849, %v328_v3   ;;  %333 = vperm.xlu0 %848, %v328_v3   ;;  %v863_v13 = vld [vmem:[%s308_s17] sm:$0xff]   ;;  %s299_s11 = scalar_lea.vmem [#allocation5], %s698_s12  ;;  %s1133_s8 = scalar_lea.hbm %s1186_s5, %s725_s7 }
  0x3f   : > { %744 = vmatpush3.bf16.msra.mxu1 %v855_v6  ;;  %764 = vmatmul.mubr.msk.bf16.vlgmr.msra.gmra.mrb[0].mxu0 %vm501_vm1, %v863_v13  ;;  %s566_s10 = sshll.u32 %s299_s11, 4  ;;  %s1135_s15 = scalar_lea.sflag [#allocation4], %s297_s27  ;;  %s1128_s10 = int_to_ptr.vmem [resolvable:$true] %s566_s10 }
  0x40   : > { %745 = vmatprep.subr.bf16.mxu1 %v981_v2  ;;  %s892_s21 = scalar_lea.vmem %s1128_s10, 256  ;;  %p1198_p10 = scmp.ne.s32.totalorder %s1191_s28, 0 }
  0x41   : > { %p893_p8 = scmp.ne.s32.totalorder %s1128_s10, %s892_s21  ;;  %s986_s16 = smov [#allocation5]  }
  0x42   : > { %344 = vperm.xlu1 %849, %v329_v5   ;;  %336 = vperm.xlu0 %848, %v329_v5   ;;  %s896_s17 = sshll.u32 %s986_s16, 4  ;;  %s897_s17 = int_to_ptr.vmem [resolvable:$false] %s896_s17 }
  0x43   : > { %746 = vmatpush3.bf16.msra.mxu1 %v856_v7  ;;  %p894_p11 = pnand %p893_p8, %p1198_p10  ;;  %s898_s24 = scalar_lea.vmem %s897_s17, 512 }
  0x44   : > { %747 = vmatprep.subr.bf16.mxu1 %v981_v2  ;;  %p899_p1 = scmp.lt.s32.totalorder %s1128_s10, %s897_s17  ;;  %p900_p3 = scmp.lt.s32.totalorder %s898_s24, %s892_s21 }
  0x45   : > { %p895_p13 = pneg %p894_p11 }
  0x46   : > { %851 = vset.pattern.permute.xlu1 %v982_v8  ;;  %850 = vset.pattern.permute.xlu0 %v982_v8  ;;  %p901_p5 = por %p900_p3, %p899_p1 }
  0x47   : > { %354 = vperm.xlu1 %851, %v329_v5   ;;  %351 = vperm.xlu0 %850, %v328_v3  }
  0x48   : > { %748 = vmatpush3.bf16.msra.mxu1 %v857_v9  ;;  %p902_p6 = pnand %p901_p5, %p895_p13 }
  0x49   : > { %749 = vmatprep.subr.bf16.mxu1 %v981_v2 }
  0x4b   : > { %852 = vset.pattern.permute.xlu1 %v983_v11  ;;  %853 = vset.pattern.permute.xlu0 %v983_v11 }
  0x4c   : > { %361 = vperm.xlu1 %852, %v328_v3   ;;  %364 = vperm.xlu0 %853, %v329_v5  }
  0x4d   : > { %750 = vmatpush3.bf16.msra.mxu1 %v858_v12 }
  0x4e   : > { %751 = vmatprep.subr.bf16.mxu1 %v981_v2 }
  0x51   : > { %752 = vmatpush3.bf16.msra.mxu1 %v859_v14 }
  0x52   : > { %753 = vmatprep.subr.bf16.mxu1 %v981_v2 }
  0x55   : > { %754 = vmatpush3.bf16.msra.mxu1 %v860_v15 }
  0x56   : > { %755 = vmatprep.subr.bf16.mxu1 %v981_v2 }
  0x59   : > { %756 = vmatpush3.bf16.msra.mxu1 %v862_v16 }
  0xbd   : > { %v342_v17 = vpop.permute.xlu1 %341  ;;  %v334_v18 = vpop.permute.xlu0 %333 }
  0xbe   : > { %vm346_vm2 = vcmp.eq.s32.totalorder %v342_v17, %v331_v22  ;;  %vm338_vm3 = vcmp.eq.s32.totalorder %v334_v18, %v331_v22 }
  0xbf   : > { %vm348_vm7 = vmor %vm338_vm3, %vm346_vm2 }
  0xc1   : > { %v345_v20 = vpop.permute.xlu1 %344  ;;  %v337_v21 = vpop.permute.xlu0 %336 }
  0xc2   : > { %vm347_vm4 = vcmp.eq.s32.totalorder %v345_v20, %v331_v22  ;;  %vm339_vm5 = vcmp.eq.s32.totalorder %v337_v21, %v331_v22 }
  0xc3   : > { %vm349_vm9 = vmor %vm339_vm5, %vm347_vm4 }
  0xc6   : > { %v355_v23 = vpop.permute.xlu1 %354  ;;  %v352_v24 = vpop.permute.xlu0 %351 }
  0xc7   : > { %vm357_vm6 = vcmp.eq.s32.totalorder %v355_v23, %v331_v22  ;;  %vm356_vm8 = vcmp.eq.s32.totalorder %v352_v24, %v331_v22 }
  0xc8   : > { %vm359_vm10 = vmor %vm349_vm9, %vm357_vm6 }
  0xc9   : > { %vm358_vm11 = vmor %vm348_vm7, %vm356_vm8 }
  0xcb   : > { %v362_v25 = vpop.permute.xlu1 %361  ;;  %v365_v26 = vpop.permute.xlu0 %364 }
  0xcc   : > { %vm366_vm12 = vcmp.eq.s32.totalorder %v362_v25, %v331_v22  ;;  %vm367_vm13 = vcmp.eq.s32.totalorder %v365_v26, %v331_v22 }
  0xcd   : > { %vm368_vm14 = vmor %vm358_vm11, %vm366_vm12 }
  0xce   : > { %vm369_vm15 = vmor %vm359_vm10, %vm367_vm13 }
  0xcf   : > { %vm713_vm0 = vmpackc.low %vm369_vm15, %vm368_vm14 }
  0xd0   : > { %758 = vmatmul.mubr.msk.bf16.vlgmr.msra.gmra.mrb[0].mxu1 %vm713_vm0, %v985_v27 }
 0x112   : > { %v539_v28 = vpop.f32.mrb[0].mxu0 }
 0x113   : > { %v765_v29 = vpop.f32.mrb[1].mxu0 }
 0x114   : > { %v542_v30 = vpop.f32.mrb[2].mxu0 }
 0x115   : > { %v766_v31 = vpop.f32.mrb[3].mxu0 }
 0x1a3   : > { %v477_v35 = vpop.f32.mrb[0].mxu1 }
 0x1a4   : > { %v484_v36 = vadd.f32 %v728_v33, %v477_v35  ;;  %v759_v37 = vpop.f32.mrb[1].mxu1 }
 0x1a5   : > { %v480_v38 = vpop.f32.mrb[2].mxu1 }
 0x1a6   : > { %v546_v39 = vadd.f32 %v539_v28, %v484_v36  ;;  %v485_v40 = vadd.f32 %v729_v34, %v480_v38  ;;  %v760_v41 = vpop.f32.mrb[3].mxu1 }
 0x1a8   : > { %548 = vst [vmem:[%s299_s11] sm:$0xff] %v546_v39  ;;  %v547_v42 = vadd.f32 %v542_v30, %v485_v40 }
 0x1aa   : > { %549 = vst [vmem:[%s299_s11 + $0x8] sm:$0xff] %v547_v42 }
 0x1ab   : > { %905 = shalt.err (!%p902_p6)
}
 0x1ac   : > { %s906_s25 = scalar_lea.hbm %s1133_s8, 256  ;;  %s910_s9 = scalar_lea.hbm %s1186_s5, 512 }
 0x1ad   : > { %p907_p7 = scmp.ne.s32.totalorder %s1133_s8, %s906_s25  ;;  %p911_p0 = scmp.lt.u32.totalorder %s1133_s8, %s1186_s5 }
 0x1ae   : > { %p912_p2 = scmp.lt.u32.totalorder %s910_s9, %s906_s25  ;;  %p914_p8 = scmp.lt.u32.totalorder %s906_s25, %s1133_s8 }
 0x1af   : > { %p908_p9 = pnand %p907_p7, %p1198_p10 }
 0x1b0   : > { %p913_p4 = por %p912_p2, %p911_p0 }
 0x1b1   : > { %p909_p12 = pneg %p908_p9 }
 0x1b2   : > { %p915_p11 = por %p914_p8, %p913_p4 }
 0x1b4   : > { %p916_p13 = pnand %p915_p11, %p909_p12 }
 0x1b6   : > { %919 = shalt.err (!%p916_p13)
}
 0x1b7   : > { %s987_s7 = smov 128   ;;  %s988_s13 = smov 8  }
 0x1b8   : > { %775 = dma.vmem_to_hbm [thread:$0]  (%p1198_p10), %s1128_s10, 256, %s1133_s8, %s1135_s15, %s987_s7, %s987_s7, %s988_s13  }
 0x1b9 PF: > { %p787_p1 = scmp.ge.s32.totalorder %s974_s23, 2  ;;  %s581_s14 = sand.u32 1, %s954_s18  }
 0x1ba   : > { %p1199_p3 = scmp.ne.s32.totalorder %s1192_s30, 0  ;;  %s582_s21 = scalar_lea.sflag [#allocation4], %s581_s14 }
 0x1bc   : > { %p782_p5 = pnand %p787_p1, %p1199_p3 }
 0x1be   : > { %949 = dma.done.wait (!%p782_p5), %s582_s21, 256  }
 0x1bf   : > { %951 = vsyncadd (!%p782_p5), %s582_s21, 4294967040  ;;  %s19_s23 = sadd.s32 1, %s974_s23   ;;  %s1200_s18 = smov %s958_s19 }
 0x1c0   : > { %p16_p6 = scmp.ge.s32.totalorder %s19_s23, 4   ;;  %s1201_s19 = smov %s962_s20 }
 0x1c1   : > { %s1202_s20 = smov %s1072_s6  ;;  %s1203_s21 = smov %s970_s22 }
 0x1c2   : > { %s1204_s22 = smov %s1206_s26  ;;  %18 = sbr.rel (!%p16_p6) target bundleno = 5 (0x5), region = 86 }
 0x1c9   :  { %587 = vsyncpa [#allocation3], 1 }
 0x1ca   :  { %589 = vsyncpa [#allocation3 + $0x1], 1 }
 0x1cb   :  { %590 = vsyncpa [#allocation4], 1 }
 0x1cc   :  { %592 = vsyncpa [#allocation4 + $0x1], 1 }

</bundles_post_ra>
